<compile_context>
chip_gen: v7x
topology: tpu7x:2x2x1
jax: 0.10.0
libtpu: 0.0.40
codegen_flags: <defaults>
</compile_context>

<pallas_src>
import functools

import jax
import jax.numpy as jnp
from jax.experimental import pallas as pl
from jax.experimental.pallas import tpu as pltpu

_VMEM_LIMIT = 48 * 1024 * 1024     # scoped VMEM: safe on v7x (64 MiB physical)
_TILE_BUDGET = 24 * 1024 * 1024    # target in-kernel working set for TB sizing


def _round_up(x, m):
    return ((x + m - 1) // m) * m


# --------------------------------------------------------------------------
# Pallas kernel: whole GlowLayer forward for one batch tile (transposed
# layout: features on sublanes, batch on lanes).
# --------------------------------------------------------------------------
def glow_kernel(zt_ref, a_ref, b1_ref, w2t_ref, b2_ref, outt_ref, ldj_ref,
                *, dim, half, d_pad):
    mm = a_ref.dtype

    zt = zt_ref[...]                                        # (D, TB) f32

    # One fused matmul:
    #   rows [:D)      -> (z @ W_perm)^T  (1x1 conv, even/odd split folded in)
    #   rows [d_pad:)  -> pre-tanh hidden of BOTH coupling MLPs
    big = jnp.dot(a_ref[...], zt.astype(mm),
                  preferred_element_type=jnp.float32)       # (d_pad+2H, TB) f32
    z1t = big[:half, :]                                     # (half, TB)
    z2t = big[half:dim, :]                                  # (half, TB)

    h = jnp.tanh(big[d_pad:, :] + b1_ref[...])              # (2H, TB) f32

    # Second layer of both nets as one block-diagonal matmul:
    #   rows [:half) = t, rows [half:) = s.
    ts = jnp.dot(w2t_ref[...], h.astype(mm),
                 preferred_element_type=jnp.float32) + b2_ref[...]   # (D, TB)
    t = ts[:half, :]
    s = ts[half:, :]

    # Affine coupling (f32 elementwise, exp on the EUP).
    x2t = z2t * jnp.exp(s) + t

    # out^T = [z1 ; x2]  -- lane-dense stores to sublane sub-ranges.
    outt_ref[:half, :] = z1t.astype(outt_ref.dtype)
    outt_ref[half:, :] = x2t.astype(outt_ref.dtype)

    # Per-sample coupling log-det: sublane reduce -> lane-dense (1, TB) row.
    ldj_ref[...] = jnp.sum(s, axis=0, keepdims=True)


# --------------------------------------------------------------------------
# Parameter construction (deterministic, matches module __init__ shapes).
# --------------------------------------------------------------------------
def make_params(key, dim, hidden):
    half = dim // 2
    keys = jax.random.split(key, 10)

    # Invertable1x1Conv: orthogonal Q -> LU; params are L, triu(U,1), diag(U).
    q, _ = jnp.linalg.qr(jax.random.normal(keys[0], (dim, dim), jnp.float32))
    P, L, U = jax.scipy.linalg.lu(q)
    S = jnp.diag(U)
    U_param = jnp.triu(U, k=1)
    L_param = L

    # net_t / net_s: Linear(half, hidden) -> tanh -> Linear(hidden, half)
    def mlp_params(k1, k2, k3, k4):
        w1 = 0.5 * jax.random.normal(k1, (half, hidden), jnp.float32)
        b1 = 0.1 * jax.random.normal(k2, (hidden,), jnp.float32)
        w2 = 0.5 * jax.random.normal(k3, (hidden, half), jnp.float32)
        b2 = 0.1 * jax.random.normal(k4, (half,), jnp.float32)
        return w1, b1, w2, b2

    net_t = mlp_params(keys[1], keys[2], keys[3], keys[4])
    net_s = mlp_params(keys[5], keys[6], keys[7], keys[8])

    return dict(P=P, L=L_param, U=U_param, S=S, net_t=net_t, net_s=net_s)


def assemble_W(P, L, U, S):
    dim = S.shape[0]
    Lm = jnp.tril(L, k=-1) + jnp.eye(dim, dtype=jnp.float32)
    Um = jnp.triu(U, k=1) + jnp.diag(S)
    return P @ (Lm @ Um)


def _choose_tb(batch, dim, hidden):
    """Batch-tile size from a VMEM byte budget (multiple of 128 lanes)."""
    d_pad = _round_up(dim, 8)
    # Rough f32 bytes per batch column: fused matmul output + tanh hidden +
    # ts / x2 / out temporaries + double-buffered z^T, out^T, ldj tiles.
    per_col = 4 * (d_pad + 2 * hidden        # big
                   + 2 * hidden              # h
                   + 4 * dim                 # ts, t/s/x2 temporaries
                   + 2 * 2 * dim             # double-buffered z^T + out^T
                   + 2)                      # double-buffered ldj row
    tb = _TILE_BUDGET // per_col
    tb = max(128, (tb // 128) * 128)
    # v7x megacore: ensure >= 2 batch tiles once the batch is worth splitting
    # across the two TensorCores.
    if batch > 256:
        tb = min(tb, _round_up(pl.cdiv(batch, 2), 128))
    if tb >= batch:
        return batch
    return tb


# --------------------------------------------------------------------------
# Wrapper calling pallas_call.
# --------------------------------------------------------------------------
@functools.partial(jax.jit, static_argnames=("matmul_dtype",))
def glow_forward(z, params, matmul_dtype=jnp.float32):
    B, D = z.shape
    half = D // 2
    d_pad = _round_up(D, 8)
    w1t, b1t, w2t, b2t = params["net_t"]
    w1s, b1s, w2s, b2s = params["net_s"]
    H = w1t.shape[1]

    W = assemble_W(params["P"], params["L"], params["U"], params["S"])

    # Fold the even/odd channel split into a column permutation of W.
    perm = jnp.concatenate([jnp.arange(0, D, 2), jnp.arange(1, D, 2)])
    W_perm = W[:, perm]                                     # (D, D) f32

    # Fuse the conv into MLP layer 1 (computed in f32, cast once).
    W1 = jnp.concatenate([w1t, w1s], axis=1)                # (half, 2H)
    Wz1 = W_perm[:, :half] @ W1                             # (D, 2H) f32

    # Transposed fused weight: rows [:D) give z1z2^T; rows [D:d_pad) are zero
    # padding so the hidden block starts on an 8-sublane boundary; rows
    # [d_pad:) give the pre-tanh hidden.
    A = jnp.concatenate(
        [W_perm.T, jnp.zeros((d_pad - D, D), jnp.float32), Wz1.T], axis=0)
    b1c = jnp.concatenate([b1t, b1s]).reshape(2 * H, 1)     # f32 column

    # Block-diagonal second layer, transposed: rows [:half) = t, [half:) = s.
    # TODO(synk): if hidden/half ever approach the MXU width (~128 on v5e,
    # ~256 on v6e/v7x) split this back into two separate dots.
    W2T = jnp.zeros((D, 2 * H), jnp.float32)
    W2T = W2T.at[:half, :H].set(w2t.T).at[half:, H:].set(w2s.T)
    b2c = jnp.concatenate([b2t, b2s]).reshape(D, 1)         # f32 column

    # Matmul operands in matmul_dtype (bf16 is fine on v5e/v6e/v7x MXUs);
    # accumulation and all elementwise math stay f32.
    A = A.astype(matmul_dtype)
    W2T = W2T.astype(matmul_dtype)

    # Batch tiling (batch lives on the lane axis). Layout plumbing (z.T) is
    # done wrapper-side so the kernel sees lane-dense tiles.
    TB = _choose_tb(B, D, H)
    B_pad = _round_up(B, TB)
    zT = z.T.astype(jnp.float32)                            # (D, B)
    if B_pad != B:
        zT = jnp.pad(zT, ((0, 0), (0, B_pad - B)))
    grid = (B_pad // TB,)

    kernel = functools.partial(glow_kernel, dim=D, half=half, d_pad=d_pad)

    outT, ldjT = pl.pallas_call(
        kernel,
        out_shape=(jax.ShapeDtypeStruct((D, B_pad), jnp.float32),
                   jax.ShapeDtypeStruct((1, B_pad), jnp.float32)),
        grid=grid,
        in_specs=[
            pl.BlockSpec((D, TB), lambda i: (0, i)),             # z^T (tiled)
            pl.BlockSpec((d_pad + 2 * H, D), lambda i: (0, 0)),  # fused conv+MLP1 weight
            pl.BlockSpec((2 * H, 1), lambda i: (0, 0)),          # b1 column
            pl.BlockSpec((D, 2 * H), lambda i: (0, 0)),          # W2^T (block-diag)
            pl.BlockSpec((D, 1), lambda i: (0, 0)),              # b2 column
        ],
        out_specs=(
            pl.BlockSpec((D, TB), lambda i: (0, i)),
            pl.BlockSpec((1, TB), lambda i: (0, i)),
        ),
        compiler_params=pltpu.CompilerParams(
            dimension_semantics=("parallel",),
            vmem_limit_bytes=_VMEM_LIMIT,
        ),
    )(zT, A, b1c, W2T, b2c)

    # Conv log-det is a weights-only scalar: computed outside the kernel.
    conv_ldj = jnp.sum(jnp.log(jnp.abs(params["S"])))
    out = outT[:, :B].T
    ldj = ldjT[0, :B] + conv_ldj
    return out, ldj


# --------------------------------------------------------------------------
# Pure-JAX reference (mirrors the PyTorch forward) for correctness checks.
# --------------------------------------------------------------------------
def glow_forward_ref(z, params):
    W = assemble_W(params["P"], params["L"], params["U"], params["S"])
    zc = z @ W
    z1, z2 = zc[:, ::2], zc[:, 1::2]

    def mlp(x, p):
        w1, b1, w2, b2 = p
        return jnp.tanh(x @ w1 + b1) @ w2 + b2

    t = mlp(z1, params["net_t"])
    s = mlp(z1, params["net_s"])
    x2 = z2 * jnp.exp(s) + t
    out = jnp.concatenate([z1, x2], axis=1)
    ldj = jnp.sum(jnp.log(jnp.abs(params["S"]))) + jnp.sum(s, axis=1)
    return out, ldj


if __name__ == "__main__":
    B, D, H = 8, 4, 32
    key = jax.random.PRNGKey(0)
    k_param, k_data = jax.random.split(key)
    params = make_params(k_param, D, H)
    z = jax.random.normal(k_data, (B, D), jnp.float32)

    # Exact f32 path.
    out, ldj = glow_forward(z, params)
    jax.block_until_ready((out, ldj))
    out_ref, ldj_ref = glow_forward_ref(z, params)
    assert jnp.allclose(out, out_ref, atol=5e-5, rtol=1e-5), "f32 out mismatch"
    assert jnp.allclose(ldj, ldj_ref, atol=5e-5, rtol=1e-5), "f32 ldj mismatch"

    # bf16 matmul operands (f32 accumulate / elementwise) vs the f32 reference.
    out_bf, ldj_bf = glow_forward(z, params, matmul_dtype=jnp.bfloat16)
    jax.block_until_ready((out_bf, ldj_bf))
    assert jnp.allclose(out_bf, out_ref, atol=1e-1, rtol=1e-1), "bf16 out mismatch"
    assert jnp.allclose(ldj_bf, ldj_ref, atol=1e-1, rtol=1e-1), "bf16 ldj mismatch"

    print("KERNEL_OK")
</pallas_src>

<mosaic_0001>
module attributes {stable_mosaic.version = 11 : i64} {
  func.func @glow_kernel(%arg0: i32, %arg1: memref<4x8xf32, #tpu.memory_space<vmem>>, %arg2: memref<72x4xf32, #tpu.memory_space<vmem>>, %arg3: memref<64x1xf32, #tpu.memory_space<vmem>>, %arg4: memref<4x64xf32, #tpu.memory_space<vmem>>, %arg5: memref<4x1xf32, #tpu.memory_space<vmem>>, %arg6: memref<4x8xf32, #tpu.memory_space<vmem>>, %arg7: memref<1x8xf32, #tpu.memory_space<vmem>>) attributes {dimension_semantics = [#tpu.dimension_semantics<parallel>], iteration_bounds = array<i64: 1>, scalar_prefetch = 0 : i64, scratch_operands = 0 : i64, tpu.core_type = #tpu.core_type<tc>, window_params = [{transform_indices = @transform_0, window_bounds = array<i64: 4, 8>}, {pipeline_mode = #tpu.pipeline_mode<synchronous>, transform_indices = @transform_1, window_bounds = array<i64: 72, 4>}, {pipeline_mode = #tpu.pipeline_mode<synchronous>, transform_indices = @transform_2, window_bounds = array<i64: 64, 1>}, {pipeline_mode = #tpu.pipeline_mode<synchronous>, transform_indices = @transform_3, window_bounds = array<i64: 4, 64>}, {pipeline_mode = #tpu.pipeline_mode<synchronous>, transform_indices = @transform_4, window_bounds = array<i64: 4, 1>}, {transform_indices = @transform_5, window_bounds = array<i64: 4, 8>}, {transform_indices = @transform_6, window_bounds = array<i64: 1, 8>}]} {
    %c0 = arith.constant 0 : index
    %c0_0 = arith.constant 0 : index
    %0 = vector.load %arg1[%c0, %c0_0] : memref<4x8xf32, #tpu.memory_space<vmem>>, vector<4x8xf32>
    %c0_1 = arith.constant 0 : index
    %c0_2 = arith.constant 0 : index
    %1 = vector.load %arg2[%c0_1, %c0_2] : memref<72x4xf32, #tpu.memory_space<vmem>>, vector<72x4xf32>
    %cst = arith.constant dense<0.000000e+00> : vector<72x8xf32>
    %2 = tpu.matmul %1, %0, %cst {dimension_numbers = #tpu.dot_dimension_numbers<[1], [0], [0], [1], [0, 0, 1, 1], [], []>} : vector<72x4xf32>, vector<4x8xf32>, vector<72x8xf32> -> vector<72x8xf32>
    %3 = vector.extract_strided_slice %2 {offsets = [0, 0], sizes = [2, 8], strides = [1, 1]} : vector<72x8xf32> to vector<2x8xf32>
    %4 = vector.extract_strided_slice %2 {offsets = [2, 0], sizes = [2, 8], strides = [1, 1]} : vector<72x8xf32> to vector<2x8xf32>
    %5 = vector.extract_strided_slice %2 {offsets = [8, 0], sizes = [64, 8], strides = [1, 1]} : vector<72x8xf32> to vector<64x8xf32>
    %c0_3 = arith.constant 0 : index
    %c0_4 = arith.constant 0 : index
    %6 = vector.load %arg3[%c0_3, %c0_4] : memref<64x1xf32, #tpu.memory_space<vmem>>, vector<64x1xf32>
    %7 = vector.broadcast %6 : vector<64x1xf32> to vector<64x8xf32>
    %8 = arith.addf %5, %7 : vector<64x8xf32>
    %9 = math.tanh %8 : vector<64x8xf32>
    %c0_5 = arith.constant 0 : index
    %c0_6 = arith.constant 0 : index
    %10 = vector.load %arg4[%c0_5, %c0_6] : memref<4x64xf32, #tpu.memory_space<vmem>>, vector<4x64xf32>
    %cst_7 = arith.constant dense<0.000000e+00> : vector<4x8xf32>
    %11 = tpu.matmul %10, %9, %cst_7 {dimension_numbers = #tpu.dot_dimension_numbers<[1], [0], [0], [1], [0, 0, 1, 1], [], []>} : vector<4x64xf32>, vector<64x8xf32>, vector<4x8xf32> -> vector<4x8xf32>
    %c0_8 = arith.constant 0 : index
    %c0_9 = arith.constant 0 : index
    %12 = vector.load %arg5[%c0_8, %c0_9] : memref<4x1xf32, #tpu.memory_space<vmem>>, vector<4x1xf32>
    %13 = vector.broadcast %12 : vector<4x1xf32> to vector<4x8xf32>
    %14 = arith.addf %11, %13 : vector<4x8xf32>
    %15 = vector.extract_strided_slice %14 {offsets = [0, 0], sizes = [2, 8], strides = [1, 1]} : vector<4x8xf32> to vector<2x8xf32>
    %16 = vector.extract_strided_slice %14 {offsets = [2, 0], sizes = [2, 8], strides = [1, 1]} : vector<4x8xf32> to vector<2x8xf32>
    %17 = math.exp %16 : vector<2x8xf32>
    %18 = arith.mulf %4, %17 : vector<2x8xf32>
    %19 = arith.addf %18, %15 : vector<2x8xf32>
    %c0_10 = arith.constant 0 : index
    %c0_11 = arith.constant 0 : index
    %20 = vector.load %arg6[%c0_10, %c0_11] : memref<4x8xf32, #tpu.memory_space<vmem>>, vector<2x8xf32>
    tpu.vector_store %arg6[%c0_10, %c0_11], %3 {strides = array<i32>} : memref<4x8xf32, #tpu.memory_space<vmem>>, vector<2x8xf32>,
    %c2 = arith.constant 2 : index
    %c0_12 = arith.constant 0 : index
    %21 = vector.load %arg6[%c2, %c0_12] : memref<4x8xf32, #tpu.memory_space<vmem>>, vector<2x8xf32>
    tpu.vector_store %arg6[%c2, %c0_12], %19 {strides = array<i32>} : memref<4x8xf32, #tpu.memory_space<vmem>>, vector<2x8xf32>,
    %cst_13 = arith.constant dense<0.000000e+00> : vector<8xf32>
    %22 = vector.multi_reduction <add>, %16, %cst_13 [0] : vector<2x8xf32> to vector<8xf32>
    %23 = vector.shape_cast %22 : vector<8xf32> to vector<1x8xf32>
    %c0_14 = arith.constant 0 : index
    %c0_15 = arith.constant 0 : index
    %24 = vector.load %arg7[%c0_14, %c0_15] : memref<1x8xf32, #tpu.memory_space<vmem>>, vector<1x8xf32>
    tpu.vector_store %arg7[%c0_14, %c0_15], %23 {strides = array<i32>} : memref<1x8xf32, #tpu.memory_space<vmem>>, vector<1x8xf32>,
    return
  }
  func.func @transform_0(%arg0: i32) -> (i32, i32) {
    %c0_i32 = arith.constant 0 : i32
    %c0_i32_0 = arith.constant 0 : i32
    return %c0_i32, %arg0 : i32, i32
  }
  func.func @transform_1(%arg0: i32) -> (i32, i32) {
    %c0_i32 = arith.constant 0 : i32
    %c0_i32_0 = arith.constant 0 : i32
    %c0_i32_1 = arith.constant 0 : i32
    return %c0_i32, %c0_i32_0 : i32, i32
  }
  func.func @transform_2(%arg0: i32) -> (i32, i32) {
    %c0_i32 = arith.constant 0 : i32
    %c0_i32_0 = arith.constant 0 : i32
    %c0_i32_1 = arith.constant 0 : i32
    return %c0_i32, %c0_i32_0 : i32, i32
  }
  func.func @transform_3(%arg0: i32) -> (i32, i32) {
    %c0_i32 = arith.constant 0 : i32
    %c0_i32_0 = arith.constant 0 : i32
    %c0_i32_1 = arith.constant 0 : i32
    return %c0_i32, %c0_i32_0 : i32, i32
  }
  func.func @transform_4(%arg0: i32) -> (i32, i32) {
    %c0_i32 = arith.constant 0 : i32
    %c0_i32_0 = arith.constant 0 : i32
    %c0_i32_1 = arith.constant 0 : i32
    return %c0_i32, %c0_i32_0 : i32, i32
  }
  func.func @transform_5(%arg0: i32) -> (i32, i32) {
    %c0_i32 = arith.constant 0 : i32
    %c0_i32_0 = arith.constant 0 : i32
    return %c0_i32, %arg0 : i32, i32
  }
  func.func @transform_6(%arg0: i32) -> (i32, i32) {
    %c0_i32 = arith.constant 0 : i32
    %c0_i32_0 = arith.constant 0 : i32
    return %c0_i32, %arg0 : i32, i32
  }
}

</mosaic_0001>

<bundles_post_ra>
// kernel: glow_forward.1
= control target key start
LH: loop header
LB: loop body
LE: loop exit
PB: predicated region body
PF: predicated region fallthrough
CT: control target
= control target key end

     0   :  { %vm61_vm0 = vcmask 1043456   ;;  %v501_v1 = vmov 0.0   ;;  %vm33_vm1 = vcmask 31744   ;;  %vm502_vm2 = vmmov 0   ;;  %s641_s0 = inlined_call_operand.vmem [shape: f32[4,8], index: 0, kind: input, shape index: {}]   ;;  %s642_s1 = inlined_call_operand.vmem [shape: f32[72,4], index: 1, kind: input, shape index: {}]   ;;  %s643_s2 = inlined_call_operand.vmem [shape: f32[64,1], index: 2, kind: input, shape index: {}]   ;;  %s644_s3 = inlined_call_operand.vmem [shape: f32[4,64], index: 3, kind: input, shape index: {}]   ;;  %s645_s4 = inlined_call_operand.vmem [shape: f32[4,1], index: 4, kind: input, shape index: {}]   ;;  %s646_s5 = inlined_call_operand.hbm [shape: f32[4,8], index: 5, kind: output, shape index: {0}]   ;;  %s647_s6 = inlined_call_operand.vmem [shape: f32[1,8], index: 6, kind: output, shape index: {1}]  }
   0x1   :  { %v23_v0 = vld [vmem:[%s641_s0] sm:$0xf]  ;;  %390 = vmatprep.subr.mxu0 %v501_v1  ;;  %450 = vmatprep.subr.mxu1 %v501_v1  ;;  %v29_v3 = vld [vmem:[%s642_s1 + $0x28] sm:$0xff]  ;;  %v177_v5 = vld [vmem:[%s643_s2 + $0x10] sm:$0xff]  ;;  %v503_v8 = vmov 0  }
   0x2   :  { %v24_v2 = vld [vmem:[%s642_s1] sm:$0xff]  ;;  %391 = vmatpush3.msk.msra.mxu0 %vm61_vm0, %v23_v0  ;;  %451 = vmatpush3.msk.msra.mxu1 %vm61_vm0, %v23_v0  ;;  %v25_v6 = vld [vmem:[%s642_s1 + $0x8] sm:$0xff]  ;;  %v30_v7 = vld [vmem:[%s642_s1 + $0x30] sm:$0xff] }
   0x3   :  { %392 = vmatprep.mubr.msk.f32.mxu0 %vm502_vm2, %v501_v1  ;;  %407 = vmatprep.mubr.msk.f32.mxu1 %vm502_vm2, %v501_v1  ;;  %v175_v4 = vld [vmem:[%s643_s2] sm:$0xff] }
   0x4   :  { %393 = vmatmul.mubr.msk.f32.vlgmr.msra.gmra.mrb[0].mxu0 %vm33_vm1, %v24_v2  ;;  %408 = vmatmul.mubr.msk.f32.vlgmr.msra.gmra.mrb[0].mxu1 %vm33_vm1, %v29_v3 }
   0x5   :  { %395 = vmatprep.mubr.msk.f32.mxu0 %vm502_vm2, %v501_v1  ;;  %410 = vmatprep.mubr.msk.f32.mxu1 %vm502_vm2, %v501_v1 }
   0x6   :  { %457 = vset.pattern.permute.xlu0 %v503_v8  ;;  %458 = vset.pattern.permute.xlu1 %v503_v8 }
   0x7   :  { %12 = vsyncpa [#allocation3], 0  ;;  %185 = vperm.xlu0 %457, %v175_v4   ;;  %195 = vperm.xlu1 %458, %v177_v5   ;;  %v176_v9 = vld [vmem:[%s643_s2 + $0x8] sm:$0xff]  ;;  %v178_v10 = vld [vmem:[%s643_s2 + $0x18] sm:$0xff]  ;;  %v504_v21 = vmov 0.0|0.0   ;;  %vm327_vm3 = vcmask 58368  }
   0x8   :  { %396 = vmatmul.mubr.msk.f32.gmra.mrb[2].mxu0 %vm33_vm1, %v25_v6  ;;  %411 = vmatmul.mubr.msk.f32.gmra.mrb[2].mxu1 %vm33_vm1, %v30_v7  ;;  %v26_v11 = vld [vmem:[%s642_s1 + $0x10] sm:$0xff]  ;;  %v31_v12 = vld [vmem:[%s642_s1 + $0x38] sm:$0xff]  ;;  %v179_v13 = vld [vmem:[%s643_s2 + $0x20] sm:$0xff]  ;;  %vm246_vm4 = vcmask 523264   ;;  %vm340_vm5 = vcmask 57344   ;;  %vm329_vm6 = vcmask 60418  }
   0x9   :  { %398 = vmatprep.mubr.msk.f32.mxu0 %vm502_vm2, %v501_v1  ;;  %413 = vmatprep.mubr.msk.f32.mxu1 %vm502_vm2, %v501_v1  ;;  %v180_v14 = vld [vmem:[%s643_s2 + $0x28] sm:$0xff]  ;;  %v27_v15 = vld [vmem:[%s642_s1 + $0x18] sm:$0xff]  ;;  %v32_v16 = vld [vmem:[%s642_s1 + $0x40] sm:$0xff] }
   0xa   :  { %v181_v17 = vld [vmem:[%s643_s2 + $0x30] sm:$0xff]  ;;  %v182_v18 = vld [vmem:[%s643_s2 + $0x38] sm:$0xff]  ;;  %v28_v19 = vld [vmem:[%s642_s1 + $0x20] sm:$0xff]  ;;  %438 = vmatprep.subr.bf16.mxu1 %v504_v21 }
   0xb   :  { %190 = vperm.xlu0 %457, %v176_v9   ;;  %200 = vperm.xlu1 %458, %v178_v10   ;;  %v240_v20 = vld [vmem:[%s645_s4] sm:$0xf]  ;;  %s505_s4 = smov [#allocation2]  }
   0xc   :  { %399 = vmatmul.mubr.msk.f32.gmra.mrb[4].mxu0 %vm33_vm1, %v26_v11  ;;  %414 = vmatmul.mubr.msk.f32.gmra.mrb[4].mxu1 %vm33_vm1, %v31_v12  ;;  %v239_v4 = vld [vmem:[%s644_s3] sm:$0xf]  ;;  %s348_s3 = sshll.u32 %s505_s4, 4  ;;  %s349_s3 = int_to_ptr.vmem [resolvable:$true] %s348_s3 }
   0xd   :  { %401 = vmatprep.mubr.msk.f32.mxu0 %vm502_vm2, %v501_v1  ;;  %416 = vmatprep.mubr.msk.f32.mxu1 %vm502_vm2, %v501_v1  ;;  %s477_s11 = scalar_lea.vmem %s349_s3, 64  ;;  %p482_p1 = scmp.lt.s32.totalorder %s349_s3, %s349_s3 }
   0xe   :  { %p478_p0 = scmp.ne.s32.totalorder %s349_s3, %s477_s11  ;;  %p483_p2 = scmp.lt.s32.totalorder %s477_s11, %s477_s11 }
   0xf   :  { %205 = vperm.xlu0 %457, %v179_v13   ;;  %210 = vperm.xlu1 %458, %v180_v14  }
  0x10   :  { %402 = vmatmul.mubr.msk.f32.gmra.mrb[6].mxu0 %vm33_vm1, %v27_v15  ;;  %417 = vmatmul.mubr.msk.f32.gmra.mrb[6].mxu1 %vm33_vm1, %v32_v16  ;;  %p484_p3 = por %p483_p2, %p482_p1 }
  0x11   :  { %404 = vmatprep.mubr.msk.f32.mxu0 %vm502_vm2, %v501_v1  ;;  %435 = vmatprep.mubr.msk.f32.mxu1 %vm502_vm2, %v501_v1 }
  0x12   :  { %p485_p4 = pnand %p484_p3, %p478_p0 }
  0x13   :  { %215 = vperm.xlu0 %457, %v181_v17   ;;  %220 = vperm.xlu1 %458, %v182_v18  }
  0x14   :  { %405 = vmatmul.mubr.msk.f32.gmra.mrb[8].mxu0 %vm33_vm1, %v28_v19 }
  0x17   :  { %243 = vperm.xlu0 %457, %v240_v20  }
  0x86   :  { %v186_v22 = vpop.permute.xlu0 %185  ;;  %v196_v23 = vpop.permute.xlu1 %195 }
  0x8a   :  { %v191_v24 = vpop.permute.xlu0 %190  ;;  %v201_v25 = vpop.permute.xlu1 %200 }
  0x8e   :  { %v206_v26 = vpop.permute.xlu0 %205  ;;  %v211_v32 = vpop.permute.xlu1 %210 }
  0x92   :  { %v216_v44 = vpop.permute.xlu0 %215  ;;  %v221_v45 = vpop.permute.xlu1 %220 }
  0x96   :  { %v244_v5 = vpop.permute.xlu0 %243 }
  0xd7   :  { %v617_v27 = vpop.f32.mrb[0].mxu0  ;;  %v156_v28 = vpop.f32.mrb[0].mxu1 }
  0xd8   :  { %328 = vst.msk [vmem:[#allocation2] sm:$0x3] %vm327_vm3, %v617_v27  ;;  %v394_v29 = vpop.f32.mrb[1].mxu0  ;;  %v409_v30 = vpop.f32.mrb[1].mxu1  ;;  %v227_v31 = vadd.f32 %v206_v26, %v156_v28 }
  0xda   :  { %459 = vtanh.f32 %v227_v31 }
  0xdb   :  { %v136_v33 = vpop.f32.mrb[2].mxu0  ;;  %v161_v34 = vpop.f32.mrb[2].mxu1 }
  0xdc   :  { %v397_v35 = vpop.f32.mrb[3].mxu0  ;;  %v412_v36 = vpop.f32.mrb[3].mxu1  ;;  %v228_v37 = vadd.f32 %v211_v32, %v161_v34  ;;  %v223_v38 = vadd.f32 %v186_v22, %v136_v33 }
  0xde   :  { %461 = vtanh.f32 %v228_v37 }
  0xdf   :  { %v141_v39 = vpop.f32.mrb[4].mxu0  ;;  %v166_v40 = vpop.f32.mrb[4].mxu1  ;;  %463 = vtanh.f32 %v223_v38 }
  0xe0   :  { %v224_v41 = vadd.f32 %v191_v24, %v141_v39  ;;  %v400_v42 = vpop.f32.mrb[5].mxu0  ;;  %v415_v43 = vpop.f32.mrb[5].mxu1  ;;  %v229_v46 = vadd.f32 %v216_v44, %v166_v40 }
  0xe2   :  { %465 = vtanh.f32 %v224_v41 }
  0xe3   :  { %v146_v47 = vpop.f32.mrb[6].mxu0  ;;  %v171_v48 = vpop.f32.mrb[6].mxu1  ;;  %467 = vtanh.f32 %v229_v46 }
  0xe4   :  { %v230_v49 = vadd.f32 %v221_v45, %v171_v48  ;;  %v403_v50 = vpop.f32.mrb[7].mxu0  ;;  %v418_v51 = vpop.f32.mrb[7].mxu1  ;;  %v225_v52 = vadd.f32 %v196_v23, %v146_v47 }
  0xe5   :  { %v460_v53 = vpop.eup %459 }
  0xe6   :  { %469 = vtanh.f32 %v230_v49 }
  0xe7   :  { %v151_v54 = vpop.f32.mrb[8].mxu0  ;;  %471 = vtanh.f32 %v225_v52 }
  0xe8   :  { %v226_v55 = vadd.f32 %v201_v25, %v151_v54  ;;  %v406_v56 = vpop.f32.mrb[9].mxu0  ;;  %v462_v57 = vpop.eup %461 }
  0xe9   :  { %v445_v58 = vpack.c.bf16 %v462_v57, %v460_v53  ;;  %v464_v59 = vpop.eup %463 }
  0xea   :  { %473 = vtanh.f32 %v226_v55 }
  0xec   :  { %v466_v60 = vpop.eup %465 }
  0xed   :  { %v439_v61 = vpack.c.bf16 %v466_v60, %v464_v59  ;;  %v468_v62 = vpop.eup %467 }
  0xef   :  { %440 = vmatpush3.bf16.msra.mxu1 %v439_v61 }
  0xf0   :  { %441 = vmatprep.subr.bf16.mxu1 %v504_v21  ;;  %v470_v63 = vpop.eup %469 }
  0xf1   :  { %v448_v0 = vpack.c.bf16 %v470_v63, %v468_v62  ;;  %v472_v1 = vpop.eup %471 }
  0xf4   :  { %v474_v2 = vpop.eup %473 }
  0xf5   :  { %v442_v3 = vpack.c.bf16 %v474_v2, %v472_v1 }
  0xf7   :  { %443 = vmatpush3.bf16.msra.mxu1 %v442_v3 }
  0xf8   :  { %444 = vmatprep.subr.bf16.mxu1 %v504_v21 }
  0xfb   :  { %446 = vmatpush3.bf16.msra.mxu1 %v445_v58 }
  0xfc   :  { %447 = vmatprep.subr.bf16.mxu1 %v504_v21 }
  0xff   :  { %449 = vmatpush3.bf16.msra.mxu1 %v448_v0 }
 0x102   :  { %436 = vmatmul.mubr.msk.f32.vlgmr.msra.gmra.mrb[8].mxu1 %vm246_vm4, %v239_v4 }
 0x1d5   :  { %v316_v6 = vpop.f32.mrb[8].mxu1 }
 0x1d6   :  { %v317_v7 = vadd.f32 %v316_v6, %v244_v5  ;;  %v437_v8 = vpop.f32.mrb[9].mxu1 }
 0x1d8   :  { %v320_v9 = vmul.f32 1.442695, %v317_v7  ;;  %v331_v10 = vrot.slane %v317_v7, 2  ;;  %v324_v18 = vrot.slane %v317_v7, 6 }
 0x1da   :  { %475 = vpow2.f32 %v320_v9  ;;  %v333_v11 = vsel %vm327_vm3, %v331_v10, 0.0 }
 0x1db   :  { %v334_v12 = vrot.slane %v333_v11, 4 }
 0x1dd   :  { %v335_v13 = vadd.f32 %v334_v12, %v333_v11 }
 0x1df   :  { %v336_v14 = vrot.slane %v335_v13, 2 }
 0x1e1   :  { %v337_v15 = vadd.f32 %v336_v14, %v335_v13 }
 0x1e3   :  { %v338_v16 = vrot.slane %v337_v15, 1 }
 0x1e4   :  { %v476_v17 = vpop.eup %475 }
 0x1e5   :  { %v339_v19 = vadd.f32 %v338_v16, %v337_v15  ;;  %v322_v20 = vmul.f32 %v476_v17, %v617_v27 }
 0x1e7   :  { %341 = vst.msk [vmem:[%s647_s6] sm:$0x1] %vm340_vm5, %v339_v19  ;;  %v326_v21 = vadd.f32 %v324_v18, %v322_v20 }
 0x1e9   :  { %330 = vst.msk [vmem:[#allocation2] sm:$0xc] %vm329_vm6, %v326_v21 }
 0x1ea   :  { %488 = shalt.err (!%p485_p4)
}
 0x1eb   :  { %s489_s14 = scalar_lea.hbm %s646_s5, 64 }
 0x1ec   :  { %p490_p5 = scmp.ne.s32.totalorder %s646_s5, %s489_s14  ;;  %p493_p6 = scmp.lt.u32.totalorder %s489_s14, %s646_s5 }
 0x1ee   :  { %p495_p7 = pnand %p493_p6, %p490_p5 }
 0x1f0   :  { %498 = shalt.err (!%p495_p7)
}
 0x1f1   :  { %351 = dma.vmem_to_hbm [thread:$0]  %s349_s3, 64, %s646_s5, [#allocation3]  }
 0x1f2   :  { %499 = dma.done.wait [#allocation3], 64  }
 0x1f3   :  { %500 = vsyncadd [#allocation3], 4294967232 }
 0x1f4   :  { %359 = vsyncpa [#allocation3], 1 }

</bundles_post_ra>
